<compile_context>
chip_gen: v7x
topology: tpu7x:2x2x1
jax: 0.10.0
libtpu: 0.0.40
codegen_flags: <defaults>
</compile_context>

<pallas_src>
import jax
import jax.numpy as jnp
from jax.experimental import pallas as pl
from jax.experimental.pallas import tpu as pltpu  # noqa: F401  (kept for scaled-up variants)

# ----- module hyper-parameters (small, consistent with the forward) -----
BATCH = 2
SEQ = 8                     # N tokens
DIM = 32                    # C channels
NUM_HEADS = 4
HEAD_DIM = DIM // NUM_HEADS
NUM_PARALLEL = 2
HIDDEN = int(DIM * 4.0)     # mlp_ratio = 4.0
EPS = 1e-5                  # nn.LayerNorm default
TOKENS = BATCH * SEQ        # flattened (B*N) rows = 16
GROUPS = NUM_PARALLEL * NUM_HEADS          # (branch, head) pairs = 8
PACKED = GROUPS * TOKENS                   # packed attention rows = 128


def _normalize(x):
    # Un-affined LayerNorm (biased variance == nn.LayerNorm). Per-branch gamma/beta are folded
    # into the following matmul weights, so the XLU mean/var reductions run once per stage.
    mu = jnp.mean(x, axis=-1, keepdims=True)
    var = jnp.mean(jnp.square(x - mu), axis=-1, keepdims=True)
    return (x - mu) * jax.lax.rsqrt(var + EPS)


def parallel_block_kernel(x_ref, mask_ref,
                          qkv_w_ref, qkv_b_ref, proj_w_ref, proj_b_ref,
                          fc1_w_ref, fc1_b_ref, fc2_w_ref, fc2_b_ref,
                          o_ref):
    x = x_ref[...]                                            # (B*N, C) = (16, 32) f32

    # ---------- stage 1: x = x + sum_p attn_p(LN1_p(x)) ----------
    hn = _normalize(x)
    # One wide fused QKV matmul for BOTH parallel branches; output columns are ordered
    # (branch, head, q/k/v, head_dim) so packing is a set of contiguous column blocks.
    qkv = jnp.dot(hn, qkv_w_ref[...], preferred_element_type=jnp.float32) + qkv_b_ref[...]  # (16,192)

    # Pack all (branch, head) groups along rows: (GROUPS*TOKENS, 3*HEAD_DIM) = (128, 24).
    # Row r = g*16 + t, t = b*8 + n  ->  (g, b) blocks are contiguous runs of 8 rows.
    packed = jnp.concatenate(
        [qkv[:, g * 3 * HEAD_DIM:(g + 1) * 3 * HEAD_DIM] for g in range(GROUPS)], axis=0)
    qp = packed[:, 0:HEAD_DIM]                                # (128, 8), q scale folded in
    kp = packed[:, HEAD_DIM:2 * HEAD_DIM]                     # (128, 8)
    vp = packed[:, 2 * HEAD_DIM:3 * HEAD_DIM]                 # (128, 8)

    # ONE score matmul for every (branch, head, batch): (128,8)@(8,128) -> one MXU tile.
    s = jax.lax.dot_general(qp, kp, (((1,), (1,)), ((), ())),
                            preferred_element_type=jnp.float32)
    s = s + mask_ref[...]                                     # prep-time block-diagonal mask
    s = s - jnp.max(s, axis=-1, keepdims=True)                # per-row max == per-head max
    e = jnp.exp(s)
    a = e * pl.reciprocal(jnp.sum(e, axis=-1, keepdims=True), approx=True)

    # ONE AV matmul: (128,128)@(128,8) -> (128,8).  Masked columns are exactly 0, so rows of
    # vp belonging to other (branch, head, batch) blocks contribute nothing.
    op = jnp.dot(a, vp, preferred_element_type=jnp.float32)

    # Unpack straight into the K-stacked proj layout (16, P*C) = (16, 64): column block g
    # (= p*NUM_HEADS + h) holds that head's output.  No VMEM scratch roundtrip.
    o_heads = jnp.concatenate(
        [op[g * TOKENS:(g + 1) * TOKENS, :] for g in range(GROUPS)], axis=1)

    # Branch sum fused into the K dim of one proj matmul: (16, 64) @ (64, 32).
    x = x + jnp.dot(o_heads, proj_w_ref[...],
                    preferred_element_type=jnp.float32) + proj_b_ref[...]

    # ---------- stage 2: x = x + sum_p mlp_p(LN2_p(x)) ----------
    hn2 = _normalize(x)
    h1 = jnp.dot(hn2, fc1_w_ref[...], preferred_element_type=jnp.float32) + fc1_b_ref[...]
    h1 = jax.nn.gelu(h1, approximate=True)                    # tanh GELU -> EUP (perf review)
    ffn = jnp.dot(h1, fc2_w_ref[...], preferred_element_type=jnp.float32) + fc2_b_ref[...]
    o_ref[...] = x + ffn


PREP_ORDER = ('attn_mask', 'qkv_w', 'qkv_b', 'proj_w', 'proj_b',
              'fc1_w', 'fc1_b', 'fc2_w', 'fc2_b')


def prepare_params(params):
    """One-time weight transform (not a per-call input pre-scale):
       * fold each branch's LayerNorm affine (gamma, beta) into qkv / fc1,
       * fold the q head scale into the q columns of qkv,
       * reorder qkv output columns to (branch, head, q/k/v, head_dim) for cheap packing,
       * concat the two branches along the OUTPUT dim for qkv / fc1,
       * stack the two branches along the K dim for proj / fc2 (fuses the branch sum),
       * build the (128,128) block-diagonal additive attention mask once."""
    P, C, H, D = NUM_PARALLEL, DIM, NUM_HEADS, HEAD_DIM
    scale = D ** -0.5

    # ---- qkv: LN1 affine + q scale folded; columns reordered to (p, h, s, d); branch-concat ----
    w = params['ln1_g'][:, :, None] * params['qkv_w']                     # (P, C, 3C)
    b = jnp.einsum('pc,pcd->pd', params['ln1_b'], params['qkv_w'])        # (P, 3C); qkv_bias=False
    col_scale = jnp.concatenate(
        [jnp.full((C,), scale, jnp.float32), jnp.ones((2 * C,), jnp.float32)])
    w = w * col_scale[None, None, :]
    b = b * col_scale[None, :]
    # original out index = s*C + h*D + d  ->  new index = ((p*H + h)*3 + s)*D + d
    qkv_w = w.reshape(P, C, 3, H, D).transpose(1, 0, 3, 2, 4).reshape(C, P * H * 3 * D)  # (32,192)
    qkv_b = b.reshape(P, 3, H, D).transpose(0, 2, 1, 3).reshape(1, P * H * 3 * D)        # (1,192)

    # ---- proj: K-stacked (branch sum fused), biases summed ----
    proj_w = jnp.concatenate([params['proj_w'][p] for p in range(P)], axis=0)   # (64, 32)
    proj_b = jnp.sum(params['proj_b'], axis=0)[None, :]                         # (1, 32)

    # ---- fc1: LN2 affine folded; branch-concat on output dim ----
    fw = params['ln2_g'][:, :, None] * params['fc1_w']                    # (P, C, H)
    fb = jnp.einsum('pc,pch->ph', params['ln2_b'], params['fc1_w']) + params['fc1_b']
    fc1_w = jnp.concatenate([fw[p] for p in range(P)], axis=1)            # (32, 256)
    fc1_b = jnp.concatenate([fb[p] for p in range(P)], axis=0)[None, :]   # (1, 256)

    # ---- fc2: K-stacked, biases summed ----
    fc2_w = jnp.concatenate([params['fc2_w'][p] for p in range(P)], axis=0)     # (256, 32)
    fc2_b = jnp.sum(params['fc2_b'], axis=0)[None, :]                           # (1, 32)

    # ---- block-diagonal additive mask for the packed (branch, head, batch) layout ----
    # packed row r = g*TOKENS + b*SEQ + n  ->  r // SEQ uniquely encodes (g, b).
    blk = jnp.arange(PACKED) // SEQ
    attn_mask = jnp.where(blk[:, None] == blk[None, :],
                          jnp.float32(0.0), jnp.float32(-1e30))                 # (128, 128)

    return dict(attn_mask=attn_mask, qkv_w=qkv_w, qkv_b=qkv_b, proj_w=proj_w, proj_b=proj_b,
                fc1_w=fc1_w, fc1_b=fc1_b, fc2_w=fc2_w, fc2_b=fc2_b)


def parallel_things_block(x, prep):
    B, N, C = x.shape
    xf = x.reshape(B * N, C)          # flatten batch*tokens; gridless single pallas_call
    args = [prep[k] for k in PREP_ORDER]

    def full_spec(shape):
        nd = len(shape)
        return pl.BlockSpec(shape, lambda: (0,) * nd)

    out = pl.pallas_call(
        parallel_block_kernel,
        out_shape=jax.ShapeDtypeStruct((B * N, C), x.dtype),
        in_specs=[full_spec(xf.shape)] + [full_spec(a.shape) for a in args],
        out_specs=full_spec((B * N, C)),
        input_output_aliases={0: 0},   # residual input buffer reused as the output buffer
    )(xf, *args)
    return out.reshape(B, N, C)


# ---------------- pure-JAX reference (mirrors the PyTorch forward, unfolded params) -------------
def reference(x, params):
    def ln(y, g, b):
        mu = y.mean(-1, keepdims=True)
        var = ((y - mu) ** 2).mean(-1, keepdims=True)
        return (y - mu) / jnp.sqrt(var + EPS) * g + b

    B, N, C = x.shape
    attn_sum = jnp.zeros_like(x)
    for p in range(NUM_PARALLEL):
        h = ln(x, params['ln1_g'][p], params['ln1_b'][p])
        qkv = h @ params['qkv_w'][p]                                  # (B, N, 3C)
        qkv = qkv.reshape(B, N, 3, NUM_HEADS, HEAD_DIM).transpose(2, 0, 3, 1, 4)
        q, k, v = qkv[0], qkv[1], qkv[2]
        q = q * (HEAD_DIM ** -0.5)
        attn = jax.nn.softmax(q @ jnp.swapaxes(k, -1, -2), axis=-1)
        o = (attn @ v).transpose(0, 2, 1, 3).reshape(B, N, C)
        o = o @ params['proj_w'][p] + params['proj_b'][p]
        attn_sum = attn_sum + o
    x = x + attn_sum

    ffn_sum = jnp.zeros_like(x)
    for p in range(NUM_PARALLEL):
        h = ln(x, params['ln2_g'][p], params['ln2_b'][p])
        h = jax.nn.gelu(h @ params['fc1_w'][p] + params['fc1_b'][p], approximate=False)
        h = h @ params['fc2_w'][p] + params['fc2_b'][p]
        ffn_sum = ffn_sum + h
    return x + ffn_sum


def init_params(key):
    ks = jax.random.split(key, 12)
    f32 = jnp.float32
    P, C, H = NUM_PARALLEL, DIM, HIDDEN
    return {
        'ln1_g': 1.0 + 0.1 * jax.random.normal(ks[0], (P, C), f32),
        'ln1_b': 0.05 * jax.random.normal(ks[1], (P, C), f32),
        'ln2_g': 1.0 + 0.1 * jax.random.normal(ks[2], (P, C), f32),
        'ln2_b': 0.05 * jax.random.normal(ks[3], (P, C), f32),
        'qkv_w': 0.02 * jax.random.normal(ks[4], (P, C, 3 * C), f32),   # qkv_bias=False default
        'proj_w': 0.02 * jax.random.normal(ks[5], (P, C, C), f32),
        'proj_b': 0.02 * jax.random.normal(ks[6], (P, C), f32),
        'fc1_w': 0.02 * jax.random.normal(ks[7], (P, C, H), f32),
        'fc1_b': 0.02 * jax.random.normal(ks[8], (P, H), f32),
        'fc2_w': 0.02 * jax.random.normal(ks[9], (P, H, C), f32),
        'fc2_b': 0.02 * jax.random.normal(ks[10], (P, C), f32),
    }


if __name__ == "__main__":
    key = jax.random.PRNGKey(0)
    kx, kp = jax.random.split(key)
    x = jax.random.normal(kx, (BATCH, SEQ, DIM), jnp.float32)
    params = init_params(kp)
    prep = prepare_params(params)      # one-time weight folding / fusion / mask build

    fwd = jax.jit(parallel_things_block)
    out = jax.block_until_ready(fwd(x, prep))

    ref = jax.block_until_ready(reference(x, params))
    assert out.shape == (BATCH, SEQ, DIM)
    assert jnp.allclose(out, ref, atol=1e-3, rtol=1e-3), \
        f"max abs err = {jnp.max(jnp.abs(out - ref))}"

    print("KERNEL_OK")
</pallas_src>

<mosaic_0001>
module attributes {stable_mosaic.version = 11 : i64} {
  func.func @parallel_block_kernel(%arg0: memref<16x32xf32, #tpu.memory_space<vmem>>, %arg1: memref<128x128xf32, #tpu.memory_space<vmem>>, %arg2: memref<32x192xf32, #tpu.memory_space<vmem>>, %arg3: memref<1x192xf32, #tpu.memory_space<vmem>>, %arg4: memref<64x32xf32, #tpu.memory_space<vmem>>, %arg5: memref<1x32xf32, #tpu.memory_space<vmem>>, %arg6: memref<32x256xf32, #tpu.memory_space<vmem>>, %arg7: memref<1x256xf32, #tpu.memory_space<vmem>>, %arg8: memref<256x32xf32, #tpu.memory_space<vmem>>, %arg9: memref<1x32xf32, #tpu.memory_space<vmem>>, %arg10: memref<16x32xf32, #tpu.memory_space<vmem>>) attributes {dimension_semantics = [], scalar_prefetch = 0 : i64, scratch_operands = 0 : i64, tpu.core_type = #tpu.core_type<tc>} {
    %c0 = arith.constant 0 : index
    %c0_0 = arith.constant 0 : index
    %0 = vector.load %arg0[%c0, %c0_0] : memref<16x32xf32, #tpu.memory_space<vmem>>, vector<16x32xf32>
    %cst = arith.constant dense<0.000000e+00> : vector<16xf32>
    %1 = vector.multi_reduction <add>, %0, %cst [1] : vector<16x32xf32> to vector<16xf32>
    %2 = vector.shape_cast %1 : vector<16xf32> to vector<16x1xf32>
    %cst_1 = arith.constant 3.200000e+01 : f32
    %3 = vector.broadcast %cst_1 : f32 to vector<16x1xf32>
    %4 = arith.divf %2, %3 : vector<16x1xf32>
    %5 = vector.broadcast %4 : vector<16x1xf32> to vector<16x32xf32>
    %6 = arith.subf %0, %5 : vector<16x32xf32>
    %7 = arith.mulf %6, %6 : vector<16x32xf32>
    %cst_2 = arith.constant dense<0.000000e+00> : vector<16xf32>
    %8 = vector.multi_reduction <add>, %7, %cst_2 [1] : vector<16x32xf32> to vector<16xf32>
    %9 = vector.shape_cast %8 : vector<16xf32> to vector<16x1xf32>
    %cst_3 = arith.constant 3.200000e+01 : f32
    %10 = vector.broadcast %cst_3 : f32 to vector<16x1xf32>
    %11 = arith.divf %9, %10 : vector<16x1xf32>
    %12 = vector.broadcast %4 : vector<16x1xf32> to vector<16x32xf32>
    %13 = arith.subf %0, %12 : vector<16x32xf32>
    %cst_4 = arith.constant 9.99999974E-6 : f32
    %14 = vector.broadcast %cst_4 : f32 to vector<16x1xf32>
    %15 = arith.addf %11, %14 : vector<16x1xf32>
    %16 = math.rsqrt %15 : vector<16x1xf32>
    %17 = vector.broadcast %16 : vector<16x1xf32> to vector<16x32xf32>
    %18 = arith.mulf %13, %17 : vector<16x32xf32>
    %c0_5 = arith.constant 0 : index
    %c0_6 = arith.constant 0 : index
    %19 = vector.load %arg2[%c0_5, %c0_6] : memref<32x192xf32, #tpu.memory_space<vmem>>, vector<32x192xf32>
    %cst_7 = arith.constant dense<0.000000e+00> : vector<16x192xf32>
    %20 = tpu.matmul %18, %19, %cst_7 {dimension_numbers = #tpu.dot_dimension_numbers<[1], [0], [0], [1], [0, 0, 1, 1], [], []>} : vector<16x32xf32>, vector<32x192xf32>, vector<16x192xf32> -> vector<16x192xf32>
    %c0_8 = arith.constant 0 : index
    %c0_9 = arith.constant 0 : index
    %21 = vector.load %arg3[%c0_8, %c0_9] : memref<1x192xf32, #tpu.memory_space<vmem>>, vector<1x192xf32>
    %22 = vector.broadcast %21 : vector<1x192xf32> to vector<16x192xf32>
    %23 = arith.addf %20, %22 : vector<16x192xf32>
    %24 = vector.extract_strided_slice %23 {offsets = [0, 0], sizes = [16, 24], strides = [1, 1]} : vector<16x192xf32> to vector<16x24xf32>
    %25 = vector.extract_strided_slice %23 {offsets = [0, 24], sizes = [16, 24], strides = [1, 1]} : vector<16x192xf32> to vector<16x24xf32>
    %26 = vector.extract_strided_slice %23 {offsets = [0, 48], sizes = [16, 24], strides = [1, 1]} : vector<16x192xf32> to vector<16x24xf32>
    %27 = vector.extract_strided_slice %23 {offsets = [0, 72], sizes = [16, 24], strides = [1, 1]} : vector<16x192xf32> to vector<16x24xf32>
    %28 = vector.extract_strided_slice %23 {offsets = [0, 96], sizes = [16, 24], strides = [1, 1]} : vector<16x192xf32> to vector<16x24xf32>
    %29 = vector.extract_strided_slice %23 {offsets = [0, 120], sizes = [16, 24], strides = [1, 1]} : vector<16x192xf32> to vector<16x24xf32>
    %30 = vector.extract_strided_slice %23 {offsets = [0, 144], sizes = [16, 24], strides = [1, 1]} : vector<16x192xf32> to vector<16x24xf32>
    %31 = vector.extract_strided_slice %23 {offsets = [0, 168], sizes = [16, 24], strides = [1, 1]} : vector<16x192xf32> to vector<16x24xf32>
    %32 = tpu.concatenate %24, %25, %26, %27, %28, %29, %30, %31 in 0 : vector<16x24xf32>, vector<16x24xf32>, vector<16x24xf32>, vector<16x24xf32>, vector<16x24xf32>, vector<16x24xf32>, vector<16x24xf32>, vector<16x24xf32> -> vector<128x24xf32>
    %33 = vector.extract_strided_slice %32 {offsets = [0, 0], sizes = [128, 8], strides = [1, 1]} : vector<128x24xf32> to vector<128x8xf32>
    %34 = vector.extract_strided_slice %32 {offsets = [0, 8], sizes = [128, 8], strides = [1, 1]} : vector<128x24xf32> to vector<128x8xf32>
    %35 = vector.extract_strided_slice %32 {offsets = [0, 16], sizes = [128, 8], strides = [1, 1]} : vector<128x24xf32> to vector<128x8xf32>
    %cst_10 = arith.constant dense<0.000000e+00> : vector<128x128xf32>
    %36 = tpu.matmul %33, %34, %cst_10 {dimension_numbers = #tpu.dot_dimension_numbers<[1], [1], [0], [0], [0, 0, 1, 0], [], []>} : vector<128x8xf32>, vector<128x8xf32>, vector<128x128xf32> -> vector<128x128xf32>
    %c0_11 = arith.constant 0 : index
    %c0_12 = arith.constant 0 : index
    %37 = vector.load %arg1[%c0_11, %c0_12] : memref<128x128xf32, #tpu.memory_space<vmem>>, vector<128x128xf32>
    %38 = arith.addf %36, %37 : vector<128x128xf32>
    %cst_13 = arith.constant dense<0xFF800000> : vector<128xf32>
    %39 = vector.multi_reduction <maximumf>, %38, %cst_13 [1] : vector<128x128xf32> to vector<128xf32>
    %40 = vector.shape_cast %39 : vector<128xf32> to vector<128x1xf32>
    %41 = vector.broadcast %40 : vector<128x1xf32> to vector<128x128xf32>
    %42 = arith.subf %38, %41 : vector<128x128xf32>
    %43 = math.exp %42 : vector<128x128xf32>
    %cst_14 = arith.constant dense<0.000000e+00> : vector<128xf32>
    %44 = vector.multi_reduction <add>, %43, %cst_14 [1] : vector<128x128xf32> to vector<128xf32>
    %45 = vector.shape_cast %44 : vector<128xf32> to vector<128x1xf32>
    %46 = tpu.reciprocal %45 {approx = true} : vector<128x1xf32> -> vector<128x1xf32>
    %47 = vector.broadcast %46 : vector<128x1xf32> to vector<128x128xf32>
    %48 = arith.mulf %43, %47 : vector<128x128xf32>
    %cst_15 = arith.constant dense<0.000000e+00> : vector<128x8xf32>
    %49 = tpu.matmul %48, %35, %cst_15 {dimension_numbers = #tpu.dot_dimension_numbers<[1], [0], [0], [1], [0, 0, 1, 1], [], []>} : vector<128x128xf32>, vector<128x8xf32>, vector<128x8xf32> -> vector<128x8xf32>
    %50 = vector.extract_strided_slice %49 {offsets = [0, 0], sizes = [16, 8], strides = [1, 1]} : vector<128x8xf32> to vector<16x8xf32>
    %51 = vector.extract_strided_slice %49 {offsets = [16, 0], sizes = [16, 8], strides = [1, 1]} : vector<128x8xf32> to vector<16x8xf32>
    %52 = vector.extract_strided_slice %49 {offsets = [32, 0], sizes = [16, 8], strides = [1, 1]} : vector<128x8xf32> to vector<16x8xf32>
    %53 = vector.extract_strided_slice %49 {offsets = [48, 0], sizes = [16, 8], strides = [1, 1]} : vector<128x8xf32> to vector<16x8xf32>
    %54 = vector.extract_strided_slice %49 {offsets = [64, 0], sizes = [16, 8], strides = [1, 1]} : vector<128x8xf32> to vector<16x8xf32>
    %55 = vector.extract_strided_slice %49 {offsets = [80, 0], sizes = [16, 8], strides = [1, 1]} : vector<128x8xf32> to vector<16x8xf32>
    %56 = vector.extract_strided_slice %49 {offsets = [96, 0], sizes = [16, 8], strides = [1, 1]} : vector<128x8xf32> to vector<16x8xf32>
    %57 = vector.extract_strided_slice %49 {offsets = [112, 0], sizes = [16, 8], strides = [1, 1]} : vector<128x8xf32> to vector<16x8xf32>
    %58 = tpu.concatenate %50, %51, %52, %53, %54, %55, %56, %57 in 1 : vector<16x8xf32>, vector<16x8xf32>, vector<16x8xf32>, vector<16x8xf32>, vector<16x8xf32>, vector<16x8xf32>, vector<16x8xf32>, vector<16x8xf32> -> vector<16x64xf32>
    %c0_16 = arith.constant 0 : index
    %c0_17 = arith.constant 0 : index
    %59 = vector.load %arg4[%c0_16, %c0_17] : memref<64x32xf32, #tpu.memory_space<vmem>>, vector<64x32xf32>
    %cst_18 = arith.constant dense<0.000000e+00> : vector<16x32xf32>
    %60 = tpu.matmul %58, %59, %cst_18 {dimension_numbers = #tpu.dot_dimension_numbers<[1], [0], [0], [1], [0, 0, 1, 1], [], []>} : vector<16x64xf32>, vector<64x32xf32>, vector<16x32xf32> -> vector<16x32xf32>
    %61 = arith.addf %0, %60 : vector<16x32xf32>
    %c0_19 = arith.constant 0 : index
    %c0_20 = arith.constant 0 : index
    %62 = vector.load %arg5[%c0_19, %c0_20] : memref<1x32xf32, #tpu.memory_space<vmem>>, vector<1x32xf32>
    %63 = vector.broadcast %62 : vector<1x32xf32> to vector<16x32xf32>
    %64 = arith.addf %61, %63 : vector<16x32xf32>
    %cst_21 = arith.constant dense<0.000000e+00> : vector<16xf32>
    %65 = vector.multi_reduction <add>, %64, %cst_21 [1] : vector<16x32xf32> to vector<16xf32>
    %66 = vector.shape_cast %65 : vector<16xf32> to vector<16x1xf32>
    %cst_22 = arith.constant 3.200000e+01 : f32
    %67 = vector.broadcast %cst_22 : f32 to vector<16x1xf32>
    %68 = arith.divf %66, %67 : vector<16x1xf32>
    %69 = vector.broadcast %68 : vector<16x1xf32> to vector<16x32xf32>
    %70 = arith.subf %64, %69 : vector<16x32xf32>
    %71 = arith.mulf %70, %70 : vector<16x32xf32>
    %cst_23 = arith.constant dense<0.000000e+00> : vector<16xf32>
    %72 = vector.multi_reduction <add>, %71, %cst_23 [1] : vector<16x32xf32> to vector<16xf32>
    %73 = vector.shape_cast %72 : vector<16xf32> to vector<16x1xf32>
    %cst_24 = arith.constant 3.200000e+01 : f32
    %74 = vector.broadcast %cst_24 : f32 to vector<16x1xf32>
    %75 = arith.divf %73, %74 : vector<16x1xf32>
    %76 = vector.broadcast %68 : vector<16x1xf32> to vector<16x32xf32>
    %77 = arith.subf %64, %76 : vector<16x32xf32>
    %cst_25 = arith.constant 9.99999974E-6 : f32
    %78 = vector.broadcast %cst_25 : f32 to vector<16x1xf32>
    %79 = arith.addf %75, %78 : vector<16x1xf32>
    %80 = math.rsqrt %79 : vector<16x1xf32>
    %81 = vector.broadcast %80 : vector<16x1xf32> to vector<16x32xf32>
    %82 = arith.mulf %77, %81 : vector<16x32xf32>
    %c0_26 = arith.constant 0 : index
    %c0_27 = arith.constant 0 : index
    %83 = vector.load %arg6[%c0_26, %c0_27] : memref<32x256xf32, #tpu.memory_space<vmem>>, vector<32x256xf32>
    %cst_28 = arith.constant dense<0.000000e+00> : vector<16x256xf32>
    %84 = tpu.matmul %82, %83, %cst_28 {dimension_numbers = #tpu.dot_dimension_numbers<[1], [0], [0], [1], [0, 0, 1, 1], [], []>} : vector<16x32xf32>, vector<32x256xf32>, vector<16x256xf32> -> vector<16x256xf32>
    %c0_29 = arith.constant 0 : index
    %c0_30 = arith.constant 0 : index
    %85 = vector.load %arg7[%c0_29, %c0_30] : memref<1x256xf32, #tpu.memory_space<vmem>>, vector<1x256xf32>
    %86 = vector.broadcast %85 : vector<1x256xf32> to vector<16x256xf32>
    %87 = arith.addf %84, %86 : vector<16x256xf32>
    %88 = arith.mulf %87, %87 : vector<16x256xf32>
    %89 = arith.mulf %87, %88 : vector<16x256xf32>
    %cst_31 = arith.constant 4.471500e-02 : f32
    %90 = vector.broadcast %cst_31 : f32 to vector<16x256xf32>
    %91 = arith.mulf %90, %89 : vector<16x256xf32>
    %92 = arith.addf %87, %91 : vector<16x256xf32>
    %cst_32 = arith.constant 0.797884583 : f32
    %93 = vector.broadcast %cst_32 : f32 to vector<16x256xf32>
    %94 = arith.mulf %93, %92 : vector<16x256xf32>
    %95 = math.tanh %94 : vector<16x256xf32>
    %cst_33 = arith.constant 1.000000e+00 : f32
    %96 = vector.broadcast %cst_33 : f32 to vector<16x256xf32>
    %97 = arith.addf %96, %95 : vector<16x256xf32>
    %cst_34 = arith.constant 5.000000e-01 : f32
    %98 = vector.broadcast %cst_34 : f32 to vector<16x256xf32>
    %99 = arith.mulf %98, %97 : vector<16x256xf32>
    %100 = arith.mulf %87, %99 : vector<16x256xf32>
    %c0_35 = arith.constant 0 : index
    %c0_36 = arith.constant 0 : index
    %101 = vector.load %arg8[%c0_35, %c0_36] : memref<256x32xf32, #tpu.memory_space<vmem>>, vector<256x32xf32>
    %cst_37 = arith.constant dense<0.000000e+00> : vector<16x32xf32>
    %102 = tpu.matmul %100, %101, %cst_37 {dimension_numbers = #tpu.dot_dimension_numbers<[1], [0], [0], [1], [0, 0, 1, 1], [], []>} : vector<16x256xf32>, vector<256x32xf32>, vector<16x32xf32> -> vector<16x32xf32>
    %c0_38 = arith.constant 0 : index
    %c0_39 = arith.constant 0 : index
    %103 = vector.load %arg9[%c0_38, %c0_39] : memref<1x32xf32, #tpu.memory_space<vmem>>, vector<1x32xf32>
    %104 = vector.broadcast %103 : vector<1x32xf32> to vector<16x32xf32>
    %105 = arith.addf %102, %104 : vector<16x32xf32>
    %106 = arith.addf %64, %105 : vector<16x32xf32>
    %c0_40 = arith.constant 0 : index
    %c0_41 = arith.constant 0 : index
    %107 = vector.load %arg10[%c0_40, %c0_41] : memref<16x32xf32, #tpu.memory_space<vmem>>, vector<16x32xf32>
    tpu.vector_store %arg10[%c0_40, %c0_41], %106 {strides = array<i32>} : memref<16x32xf32, #tpu.memory_space<vmem>>, vector<16x32xf32>,
    return
  }
}

</mosaic_0001>

<bundles_post_ra>
// kernel: parallel_things_block.1
= control target key start
LH: loop header
LB: loop body
LE: loop exit
PB: predicated region body
PF: predicated region fallthrough
CT: control target
= control target key end

     0   :  { %vm37_vm0 = vcmask 261120   ;;  %v1866_v25 = vmov 0.0   ;;  %v75_v37 = vlaneseq  ;;  %vm196_vm1 = vcmask 64512   ;;  %s1867_s14 = smov 104   ;;  %s1868_s15 = smov 56   ;;  %s2523_s0 = inlined_call_operand.vmem [shape: f32[16,32], index: 0, kind: input, shape index: {}, may-alias: {0,10}]   ;;  %s2524_s2 = inlined_call_operand.vmem [shape: f32[32,192], index: 2, kind: input, shape index: {}]   ;;  %s2525_s3 = inlined_call_operand.vmem [shape: f32[1,192], index: 3, kind: input, shape index: {}]   ;;  %s2526_s1 = inlined_call_operand.vmem [shape: f32[128,128], index: 1, kind: input, shape index: {}]   ;;  %s2527_s4 = inlined_call_operand.vmem [shape: f32[64,32], index: 4, kind: input, shape index: {}]   ;;  %s2528_s5 = inlined_call_operand.vmem [shape: f32[1,32], index: 5, kind: input, shape index: {}]   ;;  %s2529_s6 = inlined_call_operand.vmem [shape: f32[32,256], index: 6, kind: input, shape index: {}]   ;;  %s2530_s8 = inlined_call_operand.vmem [shape: f32[256,32], index: 8, kind: input, shape index: {}]   ;;  %s2531_s7 = inlined_call_operand.vmem [shape: f32[1,256], index: 7, kind: input, shape index: {}]   ;;  %s2532_s9 = inlined_call_operand.vmem [shape: f32[1,32], index: 9, kind: input, shape index: {}]   ;;  %s2533_s10 = inlined_call_operand.vmem [shape: f32[16,32], index: 10, kind: output, shape index: {}, may-alias: {0,10}]  }
   0x1   :  { %v35_v0 = vld [vmem:[%s2523_s0] sm:$0xff]  ;;  %v36_v1 = vld [vmem:[%s2523_s0 + $0x8] sm:$0xff]  ;;  %v68_v15 = vld [vmem:[%s2524_s2 + $0x18] sm:$0xff]  ;;  %155 = vmatprep.mubr.f32.mxu0 %v1866_v25  ;;  %s1870_s16 = smov 80   ;;  %s1871_s17 = smov 8   ;;  %vm859_vm3 = vcmask 130048  }
   0x2   :  { %v38_v2 = vsel %vm37_vm0, %v35_v0, 0.0  ;;  %v41_v3 = vsel %vm37_vm0, %v36_v1, 0.0  ;;  %v66_v14 = vld [vmem:[%s2524_s2 + $0x8] sm:$0xff]  ;;  %v65_v17 = vld [vmem:[%s2524_s2] sm:$0xff]  ;;  %v67_v18 = vld [vmem:[%s2524_s2 + $0x10] sm:$0xff]  ;;  %v1972_v38 = vshrl.u32 %v75_v37, 7 }
   0x3   :  { %39 = vadd.xlane.f32.xlu0 %v38_v2  ;;  %v1547_v16 = vpack.c.bf16 %v68_v15, %v66_v14  ;;  %v1549_v19 = vpack.c.bf16 %v67_v18, %v65_v17  ;;  %v70_v20 = vld [vmem:[%s2524_s2 + $0x28] sm:$0xff]  ;;  %v72_v21 = vld [vmem:[%s2524_s2 + $0x38] sm:$0xff]  ;;  %v69_v22 = vld [vmem:[%s2524_s2 + $0x20] sm:$0xff]  ;;  %s1872_s18 = smov 112   ;;  %s1873_s19 = smov 88   ;;  %vm862_vm4 = vcmask 195584  }
   0x4   :  { %v1551_v23 = vpack.c.bf16 %v72_v21, %v70_v20  ;;  %v71_v24 = vld [vmem:[%s2524_s2 + $0x30] sm:$0xff]  ;;  %v77_v39 = vsub.s32 0, %v1972_v38  ;;  %v73_v40 = vld [vmem:[%s2525_s3] sm:$0x3]  ;;  %s1869_s3 = smov 32   ;;  %v81_v48 = vsub.s32 1, %v1972_v38  ;;  %vm2047_vm2 = vmpackc.low %vm196_vm1, %vm196_vm1 }
   0x5   :  { %1548 = vmatprep.subr.bf16.mxu0 %v1547_v16  ;;  %v1553_v26 = vpack.c.bf16 %v71_v24, %v69_v22  ;;  %s1874_s20 = smov 120   ;;  %s1877_s26 = smov 40   ;;  %vm867_vm5 = vcmask 326656   ;;  %vm870_vm6 = vcmask 392192   ;;  %vm873_vm7 = vcmask 457728  }
   0x6   :  { %1550 = vmatpush1.bf16.msra.mxu0 %v1549_v19  ;;  %v78_v41 = vrot.slane %v73_v40, %v77_v39  ;;  %v82_v49 = vrot.slane %v73_v40, %v81_v48  ;;  %s1878_s2 = smov 48   ;;  %vm884_vm8 = vcmask 523264  }
   0x7   :  { %42 = vadd.xlane.f32.xlu0 %v41_v3  ;;  %1552 = vmatprep.subr.bf16.mxu0 %v1551_v23 }
   0xa   :  { %1554 = vmatpush1.bf16.msra.mxu0 %v1553_v26 }
  0x90   :  { %v40_v4 = vpop.xlane.xlu0 %39 }
  0x91   :  { %v45_v5 = vmul.f32 0.03125, %v40_v4 }
  0x93   :  { %v47_v6 = vsub.f32 %v35_v0, %v45_v5 }
  0x94   :  { %v43_v7 = vpop.xlane.xlu0 %42 }
  0x95   :  { %v46_v8 = vmul.f32 0.03125, %v43_v7  ;;  %v49_v9 = vmul.f32 %v47_v6, %v47_v6 }
  0x97   :  { %v48_v10 = vsub.f32 %v36_v1, %v46_v8  ;;  %v51_v11 = vsel %vm37_vm0, %v49_v9, 0.0 }
  0x98   :  { %52 = vadd.xlane.f32.xlu1 %v51_v11 }
  0x99   :  { %v50_v12 = vmul.f32 %v48_v10, %v48_v10 }
  0x9b   :  { %v54_v13 = vsel %vm37_vm0, %v50_v12, 0.0 }
  0x9c   :  { %55 = vadd.xlane.f32.xlu1 %v54_v13 }
 0x125   :  { %v53_v27 = vpop.xlane.xlu1 %52 }
 0x126   :  { %v57_v28 = vmul.f32 0.03125, %v53_v27 }
 0x128   :  { %v59_v29 = vadd.f32 1e-05, %v57_v28 }
 0x129   :  { %v56_v30 = vpop.xlane.xlu1 %55 }
 0x12a   :  { %1784 = vrsqrt.f32 %v59_v29  ;;  %v58_v31 = vmul.f32 0.03125, %v56_v30 }
 0x12c   :  { %v60_v32 = vadd.f32 1e-05, %v58_v31 }
 0x12e   :  { %1786 = vrsqrt.f32 %v60_v32 }
 0x134   :  { %v1785_v33 = vpop.eup %1784 }
 0x135   :  { %v63_v34 = vmul.f32 %v1785_v33, %v47_v6 }
 0x137   :  { %1264 = vmatmul.mubr.msk.f32.vlgmr.msra.gmra.mrb[0].mxu0 %vm37_vm0, %v63_v34 }
 0x138   :  { %v1787_v35 = vpop.eup %1786  ;;  %161 = vmatprep.mubr.f32.mxu0 %v1866_v25 }
 0x139   :  { %v64_v36 = vmul.f32 %v1787_v35, %v48_v10 }
 0x13b   :  { %1265 = vmatmul.mubr.msk.f32.gmra.mrb[2].mxu0 %vm37_vm0, %v64_v36 }
 0x20a   :  { %v157_v42 = vpop.f32.mrb[0].mxu0 }
 0x20b   :  { %v158_v43 = vadd.f32 %v157_v42, %v78_v41  ;;  %v159_v44 = vpop.f32.mrb[1].mxu0 }
 0x20c   :  { %v160_v50 = vadd.f32 %v159_v44, %v82_v49 }
 0x20d   :  { %170 = vrot.lane.b32.xlu0 %v158_v43, %s1867_s14  ;;  %1448 = vmatprep.mubr.msk.f32.mxu1 %vm196_vm1, %v158_v43 }
 0x20e   :  { %v163_v45 = vpop.f32.mrb[2].mxu0 }
 0x20f   :  { %v1981_v46 = vadd.f32 %v163_v45, %v78_v41  ;;  %v165_v47 = vpop.f32.mrb[3].mxu0 }
 0x210   :  { %v166_v51 = vadd.f32 %v165_v47, %v82_v49 }
 0x211   :  { %178 = vrot.lane.b32.xlu0 %v158_v43, %s1868_s15  ;;  %172 = vrot.lane.b32.xlu1 %v1981_v46, %s1867_s14  ;;  %v1704_v52 = vpack.i.bf16 %v1981_v46, %v158_v43 }
 0x215   :  { %182 = vrot.lane.b32.xlu0 %v158_v43, %s1869_s3  ;;  %174 = vrot.lane.b32.xlu1 %v158_v43, %s1870_s16 }
 0x219   :  { %188 = vrot.lane.b32.xlu0 %v158_v43, %s1871_s17  ;;  %176 = vrot.lane.b32.xlu1 %v1981_v46, %s1870_s16 }
 0x21d   :  { %192 = vrot.lane.b32.xlu0 %v1981_v46, %s1871_s17  ;;  %180 = vrot.lane.b32.xlu1 %v1981_v46, %s1868_s15 }
 0x221   :  { %199 = vrot.lane.b32.xlu0 %v160_v50, %s1872_s18  ;;  %184 = vrot.lane.b32.xlu1 %v1981_v46, %s1869_s3 }
 0x225   :  { %203 = vrot.lane.b32.xlu0 %v160_v50, %s1873_s19  ;;  %190 = vrot.lane.b32.xlu1 %v160_v50, %s1871_s17 }
 0x229   :  { %1705 = vrot.lane.b32.xlu0 %v1704_v52, %s1874_s20  ;;  %194 = vrot.lane.b32.xlu1 %v166_v51, %s1871_s17 }
 0x22d   :  { %201 = vrot.lane.b32.xlu1 %v166_v51, %s1872_s18 }
 0x231   :  { %205 = vrot.lane.b32.xlu1 %v166_v51, %s1873_s19 }
 0x27f   :  { %v2003_v53 = vpop.permute.xlu0 %170 }
 0x283   :  { %v2005_v54 = vpop.permute.xlu1 %172  ;;  %v2007_v55 = vpop.permute.xlu0 %178 }
 0x284   :  { %v1709_v56 = vpack.i.bf16 %v2005_v54, %v2003_v53 }
 0x286   :  { %1710 = vrot.lane.b32.xlu1 %v1709_v56, %s1874_s20 }
 0x287   :  { %v2012_v57 = vpop.permute.xlu1 %174  ;;  %v2014_v58 = vpop.permute.xlu0 %182 }
 0x28b   :  { %v2016_v59 = vpop.permute.xlu1 %176  ;;  %v189_v60 = vpop.permute.xlu0 %188 }
 0x28c   :  { %v1714_v61 = vpack.i.bf16 %v2016_v59, %v2012_v57 }
 0x28e   :  { %1715 = vrot.lane.b32.xlu0 %v1714_v61, %s1874_s20 }
 0x28f   :  { %v2021_v62 = vpop.permute.xlu1 %180  ;;  %v193_v63 = vpop.permute.xlu0 %192 }
 0x290   :  { %v1719_v0 = vpack.i.bf16 %v2021_v62, %v2007_v55 }
 0x292   :  { %1720 = vrot.lane.b32.xlu1 %v1719_v0, %s1874_s20 }
 0x293   :  { %v2026_v1 = vpop.permute.xlu1 %184  ;;  %v2028_v2 = vpop.permute.xlu0 %199 }
 0x294   :  { %v1724_v3 = vpack.i.bf16 %v2026_v1, %v2014_v58 }
 0x296   :  { %1725 = vrot.lane.b32.xlu0 %v1724_v3, %s1874_s20 }
 0x297   :  { %v191_v4 = vpop.permute.xlu1 %190  ;;  %v2033_v5 = vpop.permute.xlu0 %203 }
 0x298   :  { %v2036_v8 = vsel %vm196_vm1, %v189_v60, %v191_v4 }
 0x29b   :  { %v195_v6 = vpop.permute.xlu1 %194  ;;  %v1706_v7 = vpop.permute.xlu0 %1705 }
 0x29c   :  { %v2039_v9 = vsel %vm196_vm1, %v193_v63, %v195_v6  ;;  %v1708_v10 = vunpack.i.h.bf16 %v1706_v7  ;;  %v1707_v11 = vunpack.i.l.bf16 %v1706_v7 }
 0x29d   :  { %v2043_v12 = vpack.i.bf16 %v2039_v9, %v2036_v8 }
 0x29e   :  { %v1555_v14 = vpack.c.bf16 %v1708_v10, %v1707_v11 }
 0x29f   :  { %v2051_v15 = vpop.permute.xlu1 %201  ;;  %1730 = vrot.lane.b32.xlu1 %v2043_v12, %s1874_s20 }
 0x2a0   :  { %v2057_v16 = vpack.i.bf16 %v2051_v15, %v2028_v2  ;;  %1557 = vmatprep.subr.msk.bf16.mxu1 %vm2047_vm2, %v1555_v14 }
 0x2a1   :  { %1560 = vmatpush3.bf16.xpose.msk.msra.mxu1 %vm2047_vm2, %v1555_v14 }
 0x2a2   :  { %1735 = vrot.lane.b32.xlu0 %v2057_v16, %s1874_s20 }
 0x2a3   :  { %v2065_v17 = vpop.permute.xlu1 %205 }
 0x2a4   :  { %v2069_v18 = vpack.i.bf16 %v2065_v17, %v2033_v5 }
 0x2a6   :  { %1745 = vrot.lane.b32.xlu0 %v1704_v52, %s1872_s18  ;;  %1740 = vrot.lane.b32.xlu1 %v2069_v18, %s1874_s20 }
 0x2aa   :  { %1755 = vrot.lane.b32.xlu0 %v1714_v61, %s1872_s18  ;;  %1750 = vrot.lane.b32.xlu1 %v1709_v56, %s1872_s18 }
 0x2ae   :  { %1765 = vrot.lane.b32.xlu0 %v1724_v3, %s1872_s18  ;;  %1760 = vrot.lane.b32.xlu1 %v1719_v0, %s1872_s18 }
 0x2f8   :  { %v1711_v19 = vpop.permute.xlu1 %1710 }
 0x2f9   :  { %v1713_v20 = vunpack.i.h.bf16 %v1711_v19  ;;  %v1712_v21 = vunpack.i.l.bf16 %v1711_v19 }
 0x2fb   :  { %v1561_v22 = vpack.c.bf16 %v1713_v20, %v1712_v21 }
 0x2fd   :  { %1563 = vmatprep.subr.msk.bf16.mxu1 %vm2047_vm2, %v1561_v22 }
 0x2fe   :  { %1566 = vmatpush3.bf16.xpose.msk.msra.mxu1 %vm2047_vm2, %v1561_v22 }
 0x300   :  { %v1716_v23 = vpop.permute.xlu0 %1715 }
 0x301   :  { %v1718_v24 = vunpack.i.h.bf16 %v1716_v23  ;;  %v1717_v26 = vunpack.i.l.bf16 %v1716_v23 }
 0x303   :  { %v1567_v27 = vpack.c.bf16 %v1718_v24, %v1717_v26 }
 0x304   :  { %v1721_v28 = vpop.permute.xlu1 %1720 }
 0x305   :  { %v1723_v29 = vunpack.i.h.bf16 %v1721_v28  ;;  %v1722_v30 = vunpack.i.l.bf16 %v1721_v28  ;;  %1569 = vmatprep.subr.msk.bf16.mxu1 %vm2047_vm2, %v1567_v27  ;;  %v211_v28 = vld [vmem:[%s2526_s1 + $0x20] sm:$0xff] }
 0x306   :  { %1572 = vmatpush3.bf16.xpose.msk.msra.mxu1 %vm2047_vm2, %v1567_v27  ;;  %v214_v27 = vld [vmem:[%s2526_s1 + $0x38] sm:$0xff] }
 0x307   :  { %v1573_v31 = vpack.c.bf16 %v1723_v29, %v1722_v30 }
 0x308   :  { %v1726_v32 = vpop.permute.xlu0 %1725 }
 0x309   :  { %v1728_v33 = vunpack.i.h.bf16 %v1726_v32  ;;  %v1727_v34 = vunpack.i.l.bf16 %v1726_v32  ;;  %1575 = vmatprep.subr.msk.bf16.mxu1 %vm2047_vm2, %v1573_v31 }
 0x30b   :  { %v1579_v35 = vpack.c.bf16 %v1728_v33, %v1727_v34  ;;  %v216_v33 = vld [vmem:[%s2526_s1 + $0x48] sm:$0xff]  ;;  %v213_v34 = vld [vmem:[%s2526_s1 + $0x30] sm:$0xff] }
 0x30e   :  { %1578 = vmatpush3.bf16.xpose.msk.msra.mxu1 %vm2047_vm2, %v1573_v31 }
 0x30f   :  { %1581 = vmatprep.subr.msk.bf16.mxu1 %vm2047_vm2, %v1579_v35 }
 0x311   :  { %v1731_v36 = vpop.permute.xlu1 %1730 }
 0x312   :  { %v1733_v37 = vunpack.i.h.bf16 %v1731_v36  ;;  %v1732_v40 = vunpack.i.l.bf16 %v1731_v36 }
 0x314   :  { %v1585_v41 = vpack.c.bf16 %v1733_v37, %v1732_v40  ;;  %v1736_v42 = vpop.permute.xlu0 %1735 }
 0x315   :  { %v1738_v43 = vunpack.i.h.bf16 %v1736_v42  ;;  %v1737_v44 = vunpack.i.l.bf16 %v1736_v42  ;;  %v215_v42 = vld [vmem:[%s2526_s1 + $0x40] sm:$0xff] }
 0x316   :  { %1584 = vmatpush3.bf16.xpose.msk.msra.mxu1 %vm2047_vm2, %v1579_v35 }
 0x317   :  { %1587 = vmatprep.subr.msk.bf16.mxu1 %vm2047_vm2, %v1585_v41  ;;  %v1591_v52 = vpack.c.bf16 %v1738_v43, %v1737_v44 }
 0x318   :  { %v1741_v45 = vpop.permute.xlu1 %1740  ;;  %v1746_v47 = vpop.permute.xlu0 %1745 }
 0x319   :  { %v1748_v49 = vunpack.i.h.bf16 %v1746_v47  ;;  %v1747_v50 = vunpack.i.l.bf16 %v1746_v47  ;;  %v1743_v6 = vunpack.i.h.bf16 %v1741_v45  ;;  %v1742_v10 = vunpack.i.l.bf16 %v1741_v45 }
 0x31b   :  { %v1603_v51 = vpack.c.bf16 %v1748_v49, %v1747_v50  ;;  %v1597_v21 = vpack.c.bf16 %v1743_v6, %v1742_v10  ;;  %v220_v49 = vld [vmem:[%s2526_s1 + $0x68] sm:$0xff]  ;;  %v217_v50 = vld [vmem:[%s2526_s1 + $0x50] sm:$0xff] }
 0x31c   :  { %v1751_v56 = vpop.permute.xlu1 %1750  ;;  %v1756_v60 = vpop.permute.xlu0 %1755 }
 0x31d   :  { %v1753_v61 = vunpack.i.h.bf16 %v1751_v56  ;;  %v1752_v63 = vunpack.i.l.bf16 %v1751_v56  ;;  %v1758_v0 = vunpack.i.h.bf16 %v1756_v60  ;;  %v1757_v3 = vunpack.i.l.bf16 %v1756_v60  ;;  %1604 = vmatprep.subr.bf16.mxu0 %v1603_v51 }
 0x31e   :  { %1590 = vmatpush3.bf16.xpose.msk.msra.mxu1 %vm2047_vm2, %v1585_v41  ;;  %1606 = vmatpush3.bf16.msra.mxu0 %v1603_v51  ;;  %v218_v41 = vld [vmem:[%s2526_s1 + $0x58] sm:$0xff] }
 0x31f   :  { %v1607_v4 = vpack.c.bf16 %v1753_v61, %v1752_v63  ;;  %1593 = vmatprep.subr.msk.bf16.mxu1 %vm2047_vm2, %v1591_v52  ;;  %v1611_v11 = vpack.c.bf16 %v1758_v0, %v1757_v3  ;;  %v222_v61 = vld [vmem:[%s2526_s1 + $0x78] sm:$0xff]  ;;  %v219_v63 = vld [vmem:[%s2526_s1 + $0x60] sm:$0xff] }
 0x320   :  { %v1761_v7 = vpop.permute.xlu1 %1760  ;;  %v1766_v20 = vpop.permute.xlu0 %1765 }
 0x321   :  { %v1763_v14 = vunpack.i.h.bf16 %v1761_v7  ;;  %v1762_v19 = vunpack.i.l.bf16 %v1761_v7  ;;  %1608 = vmatprep.subr.bf16.mxu0 %v1607_v4  ;;  %v1768_v23 = vunpack.i.h.bf16 %v1766_v20  ;;  %v1767_v24 = vunpack.i.l.bf16 %v1766_v20  ;;  %v221_v7 = vld [vmem:[%s2526_s1 + $0x70] sm:$0xff] }
 0x322   :  { %1610 = vmatpush3.bf16.msra.mxu0 %v1607_v4 }
 0x323   :  { %1612 = vmatprep.subr.bf16.mxu0 %v1611_v11  ;;  %v1615_v22 = vpack.c.bf16 %v1763_v14, %v1762_v19  ;;  %v1619_v26 = vpack.c.bf16 %v1768_v23, %v1767_v24 }
 0x326   :  { %1596 = vmatpush3.bf16.xpose.msk.msra.mxu1 %vm2047_vm2, %v1591_v52  ;;  %1614 = vmatpush3.bf16.msra.mxu0 %v1611_v11 }
 0x327   :  { %1599 = vmatprep.subr.msk.bf16.mxu1 %vm2047_vm2, %v1597_v21  ;;  %1616 = vmatprep.subr.bf16.mxu0 %v1615_v22 }
 0x32a   :  { %1618 = vmatpush3.bf16.msra.mxu0 %v1615_v22 }
 0x32b   :  { %1620 = vmatprep.subr.bf16.mxu0 %v1619_v26 }
 0x32e   :  { %1602 = vmatpush3.bf16.xpose.msk.msra.mxu1 %vm2047_vm2, %v1597_v21  ;;  %1622 = vmatpush3.bf16.msra.mxu0 %v1619_v26 }
 0x335   :  { %1449 = vmatmul.mubr.msk.f32.vlgmr.msra.gmra.mrb[0].mxu1 %vm196_vm1, %v1981_v46  ;;  %v208_v46 = vld [vmem:[%s2526_s1 + $0x8] sm:$0xff] }
 0x336   :  { %1451 = vmatprep.mubr.msk.f32.mxu1 %vm196_vm1, %v2003_v53  ;;  %v207_v53 = vld [vmem:[%s2526_s1] sm:$0xff] }
 0x339   :  { %1452 = vmatmul.mubr.msk.f32.gmra.mrb[2].mxu1 %vm196_vm1, %v2005_v54 }
 0x33a   :  { %1454 = vmatprep.mubr.msk.f32.mxu1 %vm196_vm1, %v2012_v57 }
 0x33d   :  { %1455 = vmatmul.mubr.msk.f32.gmra.mrb[4].mxu1 %vm196_vm1, %v2016_v59  ;;  %v210_v59 = vld [vmem:[%s2526_s1 + $0x18] sm:$0xff] }
 0x33e   :  { %1457 = vmatprep.mubr.msk.f32.mxu1 %vm196_vm1, %v2007_v55 }
 0x341   :  { %1458 = vmatmul.mubr.msk.f32.gmra.mrb[6].mxu1 %vm196_vm1, %v2021_v62 }
 0x342   :  { %1460 = vmatprep.mubr.msk.f32.mxu1 %vm196_vm1, %v2014_v58 }
 0x345   :  { %1461 = vmatmul.mubr.msk.f32.gmra.mrb[8].mxu1 %vm196_vm1, %v2026_v1 }
 0x346   :  { %1463 = vmatprep.mubr.msk.f32.mxu1 %vm196_vm1, %v2036_v8  ;;  %v209_v8 = vld [vmem:[%s2526_s1 + $0x10] sm:$0xff] }
 0x349   :  { %1464 = vmatmul.mubr.msk.f32.gmra.mrb[10].mxu1 %vm196_vm1, %v2039_v9 }
 0x34a   :  { %1466 = vmatprep.mubr.msk.f32.mxu1 %vm196_vm1, %v2028_v2 }
 0x34d   :  { %1467 = vmatmul.mubr.msk.f32.gmra.mrb[12].mxu1 %vm196_vm1, %v2051_v15 }
 0x34e   :  { %1469 = vmatprep.mubr.msk.f32.mxu1 %vm196_vm1, %v2033_v5  ;;  %v212_v5 = vld [vmem:[%s2526_s1 + $0x28] sm:$0xff]  ;;  %s1875_s1 = smov 16  }
 0x351   :  { %1470 = vmatmul.mubr.msk.f32.gmra.mrb[14].mxu1 %vm196_vm1, %v2065_v17 }
 0x408   :  { %v1450_v54 = vpop.f32.mrb[0].mxu1 }
 0x409   :  { %v2142_v55 = vadd.f32 %v1450_v54, %v208_v46  ;;  %v385_v57 = vpop.f32.mrb[1].mxu1 }
 0x40a   :  { %v2144_v58 = vadd.f32 %v385_v57, %v207_v53 }
 0x40b   :  { %466 = vmax.xlane.f32.xlu1 %v2142_v55 }
 0x40c   :  { %v1453_v62 = vpop.f32.mrb[2].mxu1  ;;  %464 = vmax.xlane.f32.xlu0 %v2144_v58 }
 0x40d   :  { %v2151_v1 = vadd.f32 %v1453_v62, %v210_v59  ;;  %v395_v2 = vpop.f32.mrb[3].mxu1 }
 0x40e   :  { %v2162_v17 = vadd.f32 %v395_v2, %v209_v8 }
 0x410   :  { %v1456_v9 = vpop.f32.mrb[4].mxu1  ;;  %470 = vmax.xlane.f32.xlu0 %v2151_v1 }
 0x411   :  { %v2160_v13 = vadd.f32 %v1456_v9, %v212_v5  ;;  %v405_v15 = vpop.f32.mrb[5].mxu1 }
 0x412   :  { %v2174_v32 = vadd.f32 %v405_v15, %v211_v28 }
 0x413   :  { %474 = vmax.xlane.f32.xlu1 %v2160_v13 }
 0x414   :  { %v1459_v29 = vpop.f32.mrb[6].mxu1  ;;  %468 = vmax.xlane.f32.xlu0 %v2162_v17 }
 0x415   :  { %v2172_v30 = vadd.f32 %v1459_v29, %v214_v27  ;;  %v415_v31 = vpop.f32.mrb[7].mxu1 }
 0x416   :  { %v2186_v40 = vadd.f32 %v415_v31, %v213_v34 }
 0x417   :  { %478 = vmax.xlane.f32.xlu1 %v2172_v30 }
 0x418   :  { %v1462_v35 = vpop.f32.mrb[8].mxu1  ;;  %472 = vmax.xlane.f32.xlu0 %v2174_v32 }
 0x419   :  { %v2184_v36 = vadd.f32 %v1462_v35, %v216_v33  ;;  %v425_v37 = vpop.f32.mrb[9].mxu1 }
 0x41a   :  { %v2198_v47 = vadd.f32 %v425_v37, %v215_v42 }
 0x41b   :  { %482 = vmax.xlane.f32.xlu1 %v2184_v36 }
 0x41c   :  { %v1465_v43 = vpop.f32.mrb[10].mxu1  ;;  %476 = vmax.xlane.f32.xlu0 %v2186_v40 }
 0x41d   :  { %v2196_v44 = vadd.f32 %v1465_v43, %v218_v41  ;;  %v435_v45 = vpop.f32.mrb[11].mxu1 }
 0x41e   :  { %v2210_v60 = vadd.f32 %v435_v45, %v217_v50 }
 0x41f   :  { %486 = vmax.xlane.f32.xlu1 %v2196_v44 }
 0x420   :  { %v1468_v51 = vpop.f32.mrb[12].mxu1  ;;  %480 = vmax.xlane.f32.xlu0 %v2198_v47 }
 0x421   :  { %v2208_v52 = vadd.f32 %v1468_v51, %v220_v49  ;;  %v445_v56 = vpop.f32.mrb[13].mxu1 }
 0x422   :  { %v2222_v6 = vadd.f32 %v445_v56, %v219_v63 }
 0x423   :  { %490 = vmax.xlane.f32.xlu1 %v2208_v52 }
 0x424   :  { %v1471_v0 = vpop.f32.mrb[14].mxu1  ;;  %484 = vmax.xlane.f32.xlu0 %v2210_v60 }
 0x425   :  { %v2220_v3 = vadd.f32 %v1471_v0, %v222_v61  ;;  %v455_v4 = vpop.f32.mrb[15].mxu1 }
 0x426   :  { %v2229_v10 = vadd.f32 %v455_v4, %v221_v7 }
 0x427   :  { %494 = vmax.xlane.f32.xlu1 %v2220_v3 }
 0x428   :  { %488 = vmax.xlane.f32.xlu0 %v2222_v6 }
 0x42c   :  { %492 = vmax.xlane.f32.xlu0 %v2229_v10 }
 0x438   :  { %1770 = vrot.lane.b32.xlu1 %v2043_v12, %s1872_s18 }
 0x442   :  { %1775 = vrot.lane.b32.xlu0 %v2057_v16, %s1872_s18 }
 0x498   :  { %v467_v11 = vpop.xlane.xlu1 %466 }
 0x499   :  { %v497_v14 = vsub.f32 %v2142_v55, %v467_v11  ;;  %v465_v19 = vpop.xlane.xlu0 %464 }
 0x49a   :  { %v496_v20 = vsub.f32 %v2144_v58, %v465_v19 }
 0x49b   :  { %v514_v21 = vmul.f32 1.442695, %v497_v14 }
 0x49c   :  { %v512_v22 = vmul.f32 1.442695, %v496_v20 }
 0x49d   :  { %1788 = vpow2.f32 %v514_v21  ;;  %v471_v23 = vpop.xlane.xlu0 %470 }
 0x49e   :  { %1790 = vpow2.f32 %v512_v22  ;;  %v499_v24 = vsub.f32 %v2151_v1, %v471_v23 }
 0x4a0   :  { %v518_v26 = vmul.f32 1.442695, %v499_v24  ;;  %v475_v46 = vpop.xlane.xlu1 %474 }
 0x4a1   :  { %v501_v12 = vsub.f32 %v2160_v13, %v475_v46  ;;  %v469_v53 = vpop.xlane.xlu0 %468 }
 0x4a2   :  { %1792 = vpow2.f32 %v518_v26  ;;  %v498_v16 = vsub.f32 %v2162_v17, %v469_v53 }
 0x4a3   :  { %v522_v57 = vmul.f32 1.442695, %v501_v12 }
 0x4a4   :  { %v516_v54 = vmul.f32 1.442695, %v498_v16  ;;  %v479_v55 = vpop.xlane.xlu1 %478 }
 0x4a5   :  { %v473_v59 = vpop.xlane.xlu0 %472  ;;  %v503_v58 = vsub.f32 %v2172_v30, %v479_v55 }
 0x4a6   :  { %1794 = vpow2.f32 %v516_v54  ;;  %v500_v62 = vsub.f32 %v2174_v32, %v473_v59 }
 0x4a7   :  { %v2243_v2 = vpop.eup %1788  ;;  %1796 = vpow2.f32 %v522_v57  ;;  %v526_v13 = vmul.f32 1.442695, %v503_v58 }
 0x4a8   :  { %v2245_v1 = vpop.eup %1790  ;;  %v520_v5 = vmul.f32 1.442695, %v500_v62  ;;  %v483_v8 = vpop.xlane.xlu1 %482  ;;  %546 = vadd.xlane.f32.xlu0 %v2243_v2 }
 0x4a9   :  { %544 = vadd.xlane.f32.xlu1 %v2245_v1  ;;  %v477_v9 = vpop.xlane.xlu0 %476  ;;  %v505_v30 = vsub.f32 %v2184_v36, %v483_v8 }
 0x4aa   :  { %1798 = vpow2.f32 %v520_v5  ;;  %v502_v15 = vsub.f32 %v2186_v40, %v477_v9 }
 0x4ab   :  { %1800 = vpow2.f32 %v526_v13  ;;  %v530_v37 = vmul.f32 1.442695, %v505_v30 }
 0x4ac   :  { %v2250_v17 = vpop.eup %1792  ;;  %v487_v27 = vpop.xlane.xlu1 %486  ;;  %v524_v28 = vmul.f32 1.442695, %v502_v15 }
 0x4ad   :  { %550 = vadd.xlane.f32.xlu1 %v2250_v17  ;;  %v481_v29 = vpop.xlane.xlu0 %480  ;;  %v507_v40 = vsub.f32 %v2196_v44, %v487_v27 }
 0x4ae   :  { %v504_v31 = vsub.f32 %v2198_v47, %v481_v29  ;;  %1802 = vpow2.f32 %v524_v28 }
 0x4af   :  { %v534_v47 = vmul.f32 1.442695, %v507_v40 }
 0x4b0   :  { %v2255_v32 = vpop.eup %1794  ;;  %v528_v33 = vmul.f32 1.442695, %v504_v31  ;;  %v491_v34 = vpop.xlane.xlu1 %490 }
 0x4b1   :  { %548 = vadd.xlane.f32.xlu1 %v2255_v32  ;;  %v485_v35 = vpop.xlane.xlu0 %484  ;;  %v2259_v41 = vpop.eup %1796  ;;  %v509_v53 = vsub.f32 %v2208_v52, %v491_v34 }
 0x4b2   :  { %1804 = vpow2.f32 %v528_v33  ;;  %v506_v36 = vsub.f32 %v2210_v60, %v485_v35 }
 0x4b3   :  { %1806 = vpow2.f32 %v530_v37  ;;  %v538_v16 = vmul.f32 1.442695, %v509_v53 }
 0x4b4   :  { %v2261_v42 = vpop.eup %1798  ;;  %v495_v43 = vpop.xlane.xlu1 %494  ;;  %v532_v51 = vmul.f32 1.442695, %v506_v36  ;;  %1808 = vpow2.f32 %v534_v47 }
 0x4b5   :  { %554 = vadd.xlane.f32.xlu1 %v2259_v41  ;;  %552 = vadd.xlane.f32.xlu0 %v2261_v42  ;;  %v489_v45 = vpop.xlane.xlu0 %488  ;;  %v2266_v49 = vpop.eup %1800  ;;  %v511_v22 = vsub.f32 %v2220_v3, %v495_v43 }
 0x4b6   :  { %v508_v63 = vsub.f32 %v2222_v6, %v489_v45  ;;  %1810 = vpow2.f32 %v532_v51 }
 0x4b8   :  { %v1771_v50 = vpop.permute.xlu1 %1770  ;;  %v2270_v60 = vpop.eup %1802  ;;  %v536_v11 = vmul.f32 1.442695, %v508_v63 }
 0x4b9   :  { %v1773_v44 = vunpack.i.h.bf16 %v1771_v50  ;;  %v1772_v56 = vunpack.i.l.bf16 %v1771_v50  ;;  %558 = vadd.xlane.f32.xlu1 %v2266_v49  ;;  %v493_v61 = vpop.xlane.xlu0 %492 }
 0x4ba   :  { %v510_v14 = vsub.f32 %v2229_v10, %v493_v61  ;;  %1812 = vpow2.f32 %v536_v11  ;;  %v542_v10 = vmul.f32 1.442695, %v511_v22 }
 0x4bb   :  { %v1623_v0 = vpack.c.bf16 %v1773_v44, %v1772_v56 }
 0x4bc   :  { %v2272_v4 = vpop.eup %1804  ;;  %v540_v23 = vmul.f32 1.442695, %v510_v14 }
 0x4bd   :  { %1624 = vmatprep.subr.bf16.mxu0 %v1623_v0  ;;  %556 = vadd.xlane.f32.xlu1 %v2270_v60  ;;  %v1776_v7 = vpop.permute.xlu0 %1775  ;;  %v2277_v21 = vpop.eup %1806 }
 0x4be   :  { %560 = vadd.xlane.f32.xlu0 %v2272_v4  ;;  %v1778_v19 = vunpack.i.h.bf16 %v1776_v7  ;;  %v1777_v20 = vunpack.i.l.bf16 %v1776_v7  ;;  %1626 = vmatpush3.bf16.msra.mxu0 %v1623_v0  ;;  %v2281_v24 = vpop.eup %1808  ;;  %1814 = vpow2.f32 %v540_v23 }
 0x4bf   :  { %1816 = vpow2.f32 %v542_v10 }
 0x4c0   :  { %v1627_v6 = vpack.c.bf16 %v1778_v19, %v1777_v20  ;;  %v2284_v26 = vpop.eup %1810  ;;  %1818 = vpow2.f32 %v538_v16 }
 0x4c1   :  { %562 = vadd.xlane.f32.xlu1 %v2277_v21 }
 0x4c2   :  { %1628 = vmatprep.subr.bf16.mxu0 %v1627_v6 }
 0x4c3   :  { %1630 = vmatpush3.bf16.msra.mxu0 %v1627_v6 }
 0x4c4   :  { %v2287_v46 = vpop.eup %1812 }
 0x4c5   :  { %566 = vadd.xlane.f32.xlu1 %v2281_v24 }
 0x4c8   :  { %v2290_v3 = vpop.eup %1814 }
 0x4c9   :  { %564 = vadd.xlane.f32.xlu1 %v2284_v26  ;;  %v2293_v12 = vpop.eup %1816 }
 0x4ca   :  { %v2299_v54 = vpop.eup %1818 }
 0x4cd   :  { %568 = vadd.xlane.f32.xlu1 %v2287_v46 }
 0x4d1   :  { %572 = vadd.xlane.f32.xlu1 %v2290_v3 }
 0x4d4   :  { %1780 = vrot.lane.b32.xlu0 %v2069_v18, %s1872_s18  ;;  %s1876_s18 = smov 24  }
 0x4d5   :  { %574 = vadd.xlane.f32.xlu1 %v2293_v12 }
 0x4f3   :  { %570 = vadd.xlane.f32.xlu0 %v2299_v54 }
 0x535   :  { %v547_v8 = vpop.xlane.xlu0 %546 }
 0x536   :  { %v545_v55 = vpop.xlane.xlu1 %544 }
 0x537   :  { %1820 = vrcp.f32 %v545_v55 }
 0x538   :  { %1822 = vrcp.f32 %v547_v8  ;;  %v878_v8 = vld [vmem:[%s2527_s4 + $0x10] sm:$0xff] }
 0x53a   :  { %v551_v57 = vpop.xlane.xlu1 %550 }
 0x53e   :  { %v549_v59 = vpop.xlane.xlu1 %548 }
 0x53f   :  { %1824 = vrcp.f32 %v549_v59  ;;  %v876_v59 = vld [vmem:[%s2527_s4] sm:$0xff] }
 0x540   :  { %1826 = vrcp.f32 %v551_v57 }
 0x541   :  { %v1821_v58 = vpop.eup %1820 }
 0x542   :  { %v555_v62 = vpop.xlane.xlu1 %554  ;;  %v592_v5 = vmul.f32 %v1821_v58, %v2245_v1  ;;  %v553_v9 = vpop.xlane.xlu0 %552  ;;  %v877_v58 = vld [vmem:[%s2527_s4 + $0x8] sm:$0xff] }
 0x543   :  { %1828 = vrcp.f32 %v553_v9  ;;  %v1823_v33 = vpop.eup %1822  ;;  %v880_v9 = vld [vmem:[%s2527_s4 + $0x20] sm:$0xff] }
 0x544   :  { %1504 = vmatprep.mubr.f32.mxu0 %v592_v5  ;;  %1830 = vrcp.f32 %v555_v62  ;;  %v593_v34 = vmul.f32 %v1823_v33, %v2243_v2  ;;  %v1635_v62 = vpack.c.bf16 %v877_v58, %v876_v59 }
 0x546   :  { %v559_v18 = vpop.xlane.xlu1 %558 }
 0x549   :  { %v1825_v1 = vpop.eup %1824 }
 0x54a   :  { %v557_v52 = vpop.xlane.xlu1 %556  ;;  %v1827_v37 = vpop.eup %1826  ;;  %v594_v40 = vmul.f32 %v1825_v1, %v2255_v32 }
 0x54b   :  { %v561_v13 = vpop.xlane.xlu0 %560  ;;  %1832 = vrcp.f32 %v557_v52  ;;  %v595_v36 = vmul.f32 %v1827_v37, %v2250_v17 }
 0x54c   :  { %1834 = vrcp.f32 %v559_v18  ;;  %v879_v18 = vld [vmem:[%s2527_s4 + $0x18] sm:$0xff] }
 0x54d   :  { %1836 = vrcp.f32 %v561_v13  ;;  %v1829_v43 = vpop.eup %1828  ;;  %v1639_v13 = vpack.c.bf16 %v879_v18, %v878_v8 }
 0x54e   :  { %v563_v15 = vpop.xlane.xlu1 %562  ;;  %v1831_v45 = vpop.eup %1830  ;;  %v596_v50 = vmul.f32 %v1829_v43, %v2261_v42 }
 0x54f   :  { %v1781_v27 = vpop.permute.xlu0 %1780  ;;  %1838 = vrcp.f32 %v563_v15  ;;  %v597_v2 = vmul.f32 %v1831_v45, %v2259_v41  ;;  %v881_v15 = vld [vmem:[%s2527_s4 + $0x28] sm:$0xff] }
 0x550   :  { %v1783_v28 = vunpack.i.h.bf16 %v1781_v27  ;;  %v1782_v29 = vunpack.i.l.bf16 %v1781_v27  ;;  %v1643_v27 = vpack.c.bf16 %v881_v15, %v880_v9 }
 0x552   :  { %v1631_v30 = vpack.c.bf16 %v1783_v28, %v1782_v29  ;;  %v567_v31 = vpop.xlane.xlu1 %566  ;;  %v882_v28 = vld [vmem:[%s2527_s4 + $0x30] sm:$0xff]  ;;  %v883_v29 = vld [vmem:[%s2527_s4 + $0x38] sm:$0xff] }
 0x554   :  { %1632 = vmatprep.subr.bf16.mxu0 %v1631_v30 }
 0x555   :  { %1634 = vmatpush3.bf16.msra.mxu0 %v1631_v30  ;;  %v1833_v51 = vpop.eup %1832  ;;  %v1647_v30 = vpack.c.bf16 %v883_v29, %v882_v28  ;;  %v1005_v28 = vld [vmem:[%s2529_s6 + $0x10] sm:$0xff] }
 0x556   :  { %v565_v35 = vpop.xlane.xlu1 %564  ;;  %v1835_v44 = vpop.eup %1834  ;;  %v598_v32 = vmul.f32 %v1833_v51, %v2270_v60  ;;  %1636 = vmatprep.subr.bf16.mxu0 %v1635_v62 }
 0x557   :  { %1840 = vrcp.f32 %v565_v35  ;;  %v1837_v56 = vpop.eup %1836  ;;  %v599_v61 = vmul.f32 %v1835_v44, %v2266_v49 }
 0x558   :  { %1505 = vmatmul.mubr.f32.vlgmr.msra.gmra.mrb[4].mxu0 %v593_v34  ;;  %1842 = vrcp.f32 %v567_v31  ;;  %v600_v63 = vmul.f32 %v1837_v56, %v2272_v4 }
 0x559   :  { %1507 = vmatprep.mubr.f32.mxu0 %v594_v40  ;;  %v1839_v17 = vpop.eup %1838  ;;  %1638 = vmatpush3.bf16.msra.mxu0 %v1635_v62 }
 0x55a   :  { %v569_v47 = vpop.xlane.xlu1 %568  ;;  %v601_v42 = vmul.f32 %v1839_v17, %v2277_v21  ;;  %1640 = vmatprep.subr.bf16.mxu0 %v1639_v13 }
 0x55b   :  { %1844 = vrcp.f32 %v569_v47 }
 0x55c   :  { %1508 = vmatmul.mubr.f32.gmra.mrb[6].mxu0 %v595_v36 }
 0x55d   :  { %1510 = vmatprep.mubr.f32.mxu0 %v596_v50  ;;  %1642 = vmatpush3.bf16.msra.mxu0 %v1639_v13  ;;  %v1006_v13 = vld [vmem:[%s2529_s6 + $0x18] sm:$0xff] }
 0x55e   :  { %v573_v49 = vpop.xlane.xlu1 %572  ;;  %1644 = vmatprep.subr.bf16.mxu0 %v1643_v27 }
 0x55f   :  { %1846 = vrcp.f32 %v573_v49 }
 0x560   :  { %1511 = vmatmul.mubr.f32.gmra.mrb[8].mxu0 %v597_v2 }
 0x561   :  { %1513 = vmatprep.mubr.f32.mxu0 %v598_v32  ;;  %v1841_v0 = vpop.eup %1840  ;;  %1646 = vmatpush3.bf16.msra.mxu0 %v1643_v27  ;;  %v1003_v27 = vld [vmem:[%s2529_s6] sm:$0xff] }
 0x562   :  { %v1843_v7 = vpop.eup %1842  ;;  %v602_v11 = vmul.f32 %v1841_v0, %v2284_v26  ;;  %v575_v4 = vpop.xlane.xlu1 %574  ;;  %1648 = vmatprep.subr.bf16.mxu0 %v1647_v30  ;;  %v1653_v29 = vpack.c.bf16 %v1005_v28, %v1003_v27  ;;  %v1155_v27 = vld [vmem:[%s2530_s8 + $0x68] sm:$0xff] }
 0x563   :  { %v603_v60 = vmul.f32 %v1843_v7, %v2281_v24 }
 0x564   :  { %1514 = vmatmul.mubr.f32.gmra.mrb[10].mxu0 %v599_v61 }
 0x565   :  { %1516 = vmatprep.mubr.f32.mxu0 %v600_v63  ;;  %v1845_v41 = vpop.eup %1844  ;;  %1650 = vmatpush3.bf16.msra.mxu0 %v1647_v30  ;;  %v1008_v30 = vld [vmem:[%s2529_s6 + $0x28] sm:$0xff] }
 0x566   :  { %v604_v14 = vmul.f32 %v1845_v41, %v2287_v46 }
 0x568   :  { %1517 = vmatmul.mubr.f32.gmra.mrb[12].mxu0 %v601_v42 }
 0x569   :  { %1519 = vmatprep.mubr.f32.mxu0 %v602_v11  ;;  %v1847_v20 = vpop.eup %1846 }
 0x56a   :  { %v606_v23 = vmul.f32 %v1847_v20, %v2290_v3 }
 0x56c   :  { %1520 = vmatmul.mubr.f32.gmra.mrb[14].mxu0 %v603_v60 }
 0x56d   :  { %1522 = vmatprep.mubr.f32.mxu0 %v604_v14 }
 0x580   :  { %v571_v19 = vpop.xlane.xlu0 %570 }
 0x581   :  { %1848 = vrcp.f32 %v571_v19 }
 0x582   :  { %1850 = vrcp.f32 %v575_v4 }
 0x58b   :  { %v1849_v21 = vpop.eup %1848 }
 0x58c   :  { %v605_v6 = vmul.f32 %v1849_v21, %v2299_v54  ;;  %v1851_v22 = vpop.eup %1850 }
 0x58d   :  { %v607_v24 = vmul.f32 %v1851_v22, %v2293_v12  ;;  %v1300_v22 = vld [vmem:[%s2528_s5] ss:$0 sm:$0xff] }
 0x58e   :  { %1523 = vmatmul.mubr.f32.gmra.mrb[16].mxu0 %v605_v6 }
 0x58f   :  { %1525 = vmatprep.mubr.f32.mxu0 %v606_v23  ;;  %v1864_v23 = vld [vmem:[%s2523_s0 + $0x8] sm:$0xff] }
 0x592   :  { %1526 = vmatmul.mubr.f32.gmra.mrb[18].mxu0 %v607_v24 }
 0x62b   :  { %v2318_v10 = vpop.f32.mrb[4].mxu0 }
 0x62c   :  { %v2320_v26 = vpop.f32.mrb[5].mxu0 }
 0x62f   :  { %v1509_v46 = vpop.f32.mrb[6].mxu0 }
 0x630   :  { %805 = vrot.lane.b32.xlu1 %v1509_v46, %s1871_s17  ;;  %v732_v53 = vpop.f32.mrb[7].mxu0 }
 0x633   :  { %v1512_v16 = vpop.f32.mrb[8].mxu0 }
 0x634   :  { %803 = vrot.lane.b32.xlu1 %v732_v53, %s1871_s17  ;;  %v742_v54 = vpop.f32.mrb[9].mxu0 }
 0x635   :  { %811 = vrot.lane.b32.xlu0 %v742_v54, %s1875_s1 }
 0x637   :  { %v1515_v3 = vpop.f32.mrb[10].mxu0 }
 0x638   :  { %813 = vrot.lane.b32.xlu1 %v1512_v16, %s1875_s1  ;;  %v752_v55 = vpop.f32.mrb[11].mxu0 }
 0x63b   :  { %v1518_v57 = vpop.f32.mrb[12].mxu0 }
 0x63c   :  { %821 = vrot.lane.b32.xlu1 %v1515_v3, %s1876_s18  ;;  %v762_v12 = vpop.f32.mrb[13].mxu0 }
 0x63f   :  { %v1521_v5 = vpop.f32.mrb[14].mxu0 }
 0x640   :  { %819 = vrot.lane.b32.xlu1 %v752_v55, %s1876_s18  ;;  %837 = vrot.lane.b32.xlu0 %v1521_v5, %s1877_s26  ;;  %v772_v52 = vpop.f32.mrb[15].mxu0 }
 0x644   :  { %829 = vrot.lane.b32.xlu1 %v1518_v57, %s1869_s3 }
 0x648   :  { %827 = vrot.lane.b32.xlu1 %v762_v12, %s1869_s3 }
 0x64c   :  { %835 = vrot.lane.b32.xlu1 %v772_v52, %s1877_s26  ;;  %v1004_v52 = vld [vmem:[%s2529_s6 + $0x8] sm:$0xff] }
 0x64d   :  { %v1651_v15 = vpack.c.bf16 %v1006_v13, %v1004_v52  ;;  %v1171_v52 = vld [vmem:[%s2530_s8 + $0xe8] sm:$0xff] }
 0x64f   :  { %1652 = vmatprep.subr.bf16.mxu0 %v1651_v15  ;;  %v1154_v15 = vld [vmem:[%s2530_s8 + $0x60] sm:$0xff] }
 0x650   :  { %v1685_v28 = vpack.c.bf16 %v1155_v27, %v1154_v15 }
 0x661   :  { %v1524_v31 = vpop.f32.mrb[16].mxu0 }
 0x662   :  { %845 = vrot.lane.b32.xlu0 %v1524_v31, %s1878_s2  ;;  %v782_v33 = vpop.f32.mrb[17].mxu0  ;;  %v1010_v31 = vld [vmem:[%s2529_s6 + $0x38] sm:$0xff] }
 0x663   :  { %843 = vrot.lane.b32.xlu1 %v782_v33, %s1878_s2  ;;  %v1655_v33 = vpack.c.bf16 %v1010_v31, %v1008_v30  ;;  %v1173_v30 = vld [vmem:[%s2530_s8 + $0xf8] sm:$0xff] }
 0x665   :  { %v1527_v1 = vpop.f32.mrb[18].mxu0 }
 0x666   :  { %853 = vrot.lane.b32.xlu0 %v1527_v1, %s1868_s15  ;;  %v792_v34 = vpop.f32.mrb[19].mxu0  ;;  %v1007_v1 = vld [vmem:[%s2529_s6 + $0x20] sm:$0xff] }
 0x667   :  { %851 = vrot.lane.b32.xlu1 %v792_v34, %s1868_s15  ;;  %v1009_v34 = vld [vmem:[%s2529_s6 + $0x30] sm:$0xff] }
 0x6a2   :  { %v806_v35 = vpop.permute.xlu1 %805 }
 0x6a3   :  { %v858_v32 = vsel %vm196_vm1, %v2318_v10, %v806_v35  ;;  %v1657_v35 = vpack.c.bf16 %v1009_v34, %v1007_v1  ;;  %v1157_v1 = vld [vmem:[%s2530_s8 + $0x78] sm:$0xff] }
 0x6a6   :  { %v804_v37 = vpop.permute.xlu1 %803 }
 0x6a7   :  { %v812_v50 = vpop.permute.xlu0 %811  ;;  %v857_v44 = vsel %vm196_vm1, %v2320_v26, %v804_v37  ;;  %v1865_v26 = vld [vmem:[%s2523_s0] sm:$0xff] }
 0x6a8   :  { %v860_v17 = vsel %vm859_vm3, %v857_v44, %v812_v50  ;;  %v1158_v37 = vld [vmem:[%s2530_s8 + $0x80] sm:$0xff] }
 0x6aa   :  { %v814_v40 = vpop.permute.xlu1 %813 }
 0x6ab   :  { %v861_v56 = vsel %vm859_vm3, %v858_v32, %v814_v40  ;;  %v1159_v40 = vld [vmem:[%s2530_s8 + $0x88] sm:$0xff] }
 0x6ae   :  { %v822_v43 = vpop.permute.xlu1 %821 }
 0x6af   :  { %v864_v63 = vsel %vm862_vm4, %v861_v56, %v822_v43  ;;  %v1659_v43 = vpack.c.bf16 %v1159_v40, %v1158_v37 }
 0x6b1   :  { %1660 = vmatprep.subr.bf16.mxu1 %v1659_v43 }
 0x6b2   :  { %v820_v36 = vpop.permute.xlu1 %819  ;;  %v838_v51 = vpop.permute.xlu0 %837 }
 0x6b3   :  { %v863_v42 = vsel %vm862_vm4, %v860_v17, %v820_v36  ;;  %v1142_v17 = vld [vmem:[%s2530_s8] sm:$0xff] }
 0x6b6   :  { %v830_v45 = vpop.permute.xlu1 %829 }
 0x6b7   :  { %v866_v7 = vsel %vm37_vm0, %v864_v63, %v830_v45  ;;  %v1143_v63 = vld [vmem:[%s2530_s8 + $0x8] sm:$0xff] }
 0x6b8   :  { %v869_v14 = vsel %vm867_vm5, %v866_v7, %v838_v51 }
 0x6ba   :  { %v828_v47 = vpop.permute.xlu1 %827 }
 0x6bb   :  { %v865_v11 = vsel %vm37_vm0, %v863_v42, %v828_v47  ;;  %v1160_v42 = vld [vmem:[%s2530_s8 + $0x90] sm:$0xff] }
 0x6be   :  { %v836_v2 = vpop.permute.xlu1 %835 }
 0x6bf   :  { %v868_v41 = vsel %vm867_vm5, %v865_v11, %v836_v2  ;;  %v1144_v11 = vld [vmem:[%s2530_s8 + $0x10] sm:$0xff] }
 0x6d4   :  { %v846_v61 = vpop.permute.xlu0 %845 }
 0x6d5   :  { %v844_v0 = vpop.permute.xlu1 %843  ;;  %v872_v19 = vsel %vm870_vm6, %v869_v14, %v846_v61  ;;  %v1162_v14 = vld [vmem:[%s2530_s8 + $0xa0] sm:$0xff] }
 0x6d6   :  { %v871_v49 = vsel %vm870_vm6, %v868_v41, %v844_v0  ;;  %v1661_v0 = vpack.c.bf16 %v1143_v63, %v1142_v17  ;;  %v1145_v41 = vld [vmem:[%s2530_s8 + $0x18] sm:$0xff] }
 0x6d8   :  { %v854_v60 = vpop.permute.xlu0 %853  ;;  %1662 = vmatpush3.bf16.msra.mxu1 %v1661_v0 }
 0x6d9   :  { %v852_v4 = vpop.permute.xlu1 %851  ;;  %v875_v21 = vsel %vm873_vm7, %v872_v19, %v854_v60  ;;  %v1665_v60 = vpack.c.bf16 %v1145_v41, %v1144_v11  ;;  %v1146_v19 = vld [vmem:[%s2530_s8 + $0x20] sm:$0xff] }
 0x6da   :  { %v874_v20 = vsel %vm873_vm7, %v871_v49, %v852_v4  ;;  %v1163_v49 = vld [vmem:[%s2530_s8 + $0xa8] sm:$0xff] }
 0x6db   :  { %1544 = vmatprep.mubr.msk.f32.mxu0 %vm884_vm8, %v874_v20  ;;  %v1667_v4 = vpack.c.bf16 %v1163_v49, %v1162_v14  ;;  %v1147_v20 = vld [vmem:[%s2530_s8 + $0x28] sm:$0xff] }
 0x6dc   :  { %1545 = vmatmul.mubr.msk.f32.vlgmr.msra.gmra.mrb[20].mxu0 %vm884_vm8, %v875_v21  ;;  %v1669_v21 = vpack.c.bf16 %v1147_v20, %v1146_v19 }
 0x6dd   :  { %1093 = vmatprep.mubr.f32.mxu0 %v1866_v25  ;;  %1654 = vmatpush1.bf16.msra.mxu0 %v1653_v29  ;;  %v1172_v29 = vld [vmem:[%s2530_s8 + $0xf0] sm:$0xff] }
 0x6de   :  { %1656 = vmatprep.subr.bf16.mxu0 %v1655_v33  ;;  %v1687_v31 = vpack.c.bf16 %v1173_v30, %v1172_v29  ;;  %v1156_v33 = vld [vmem:[%s2530_s8 + $0x70] sm:$0xff] }
 0x6df   :  { %v1689_v34 = vpack.c.bf16 %v1157_v1, %v1156_v33 }
 0x6e1   :  { %1658 = vmatpush1.bf16.msra.mxu0 %v1657_v35  ;;  %v1011_v35 = vld [vmem:[%s2531_s7] sm:$0x3] }
 0x6e2   :  { %v1016_v37 = vrot.slane %v1011_v35, %v77_v39  ;;  %v1020_v40 = vrot.slane %v1011_v35, %v81_v48 }
 0x7af   :  { %v1546_v6 = vpop.f32.mrb[20].mxu0 }
 0x7b0   :  { %v967_v24 = vadd.f32 %v1864_v23, %v1546_v6  ;;  %v957_v10 = vpop.f32.mrb[21].mxu0  ;;  %v1164_v6 = vld [vmem:[%s2530_s8 + $0xb0] sm:$0xff] }
 0x7b1   :  { %v966_v46 = vadd.f32 %v1865_v26, %v957_v10  ;;  %v1149_v10 = vld [vmem:[%s2530_s8 + $0x38] sm:$0xff] }
 0x7b2   :  { %v2368_v53 = vadd.f32 %v1300_v22, %v967_v24  ;;  %v1148_v24 = vld [vmem:[%s2530_s8 + $0x30] sm:$0xff] }
 0x7b3   :  { %v2370_v16 = vadd.f32 %v1300_v22, %v966_v46  ;;  %v1165_v22 = vld [vmem:[%s2530_s8 + $0xb8] sm:$0xff]  ;;  %v1673_v26 = vpack.c.bf16 %v1149_v10, %v1148_v24  ;;  %v1166_v46 = vld [vmem:[%s2530_s8 + $0xc0] sm:$0xff] }
 0x7b4   :  { %v980_v54 = vsel %vm37_vm0, %v2368_v53, 0.0  ;;  %v1671_v23 = vpack.c.bf16 %v1165_v22, %v1164_v6 }
 0x7b5   :  { %981 = vadd.xlane.f32.xlu0 %v980_v54  ;;  %v977_v3 = vsel %vm37_vm0, %v2370_v16, 0.0  ;;  %v1167_v54 = vld [vmem:[%s2530_s8 + $0xc8] sm:$0xff] }
 0x7b6   :  { %978 = vadd.xlane.f32.xlu1 %v977_v3  ;;  %v1675_v3 = vpack.c.bf16 %v1167_v54, %v1166_v46 }
 0x842   :  { %v982_v55 = vpop.xlane.xlu0 %981 }
 0x843   :  { %v984_v57 = vmul.f32 0.03125, %v982_v55  ;;  %v979_v12 = vpop.xlane.xlu1 %978  ;;  %v1150_v55 = vld [vmem:[%s2530_s8 + $0x40] sm:$0xff] }
 0x844   :  { %v983_v59 = vmul.f32 0.03125, %v979_v12 }
 0x845   :  { %v986_v58 = vsub.f32 %v2368_v53, %v984_v57  ;;  %v1151_v57 = vld [vmem:[%s2530_s8 + $0x48] sm:$0xff] }
 0x846   :  { %v985_v62 = vsub.f32 %v2370_v16, %v983_v59  ;;  %v1677_v12 = vpack.c.bf16 %v1151_v57, %v1150_v55  ;;  %v1168_v59 = vld [vmem:[%s2530_s8 + $0xd0] sm:$0xff] }
 0x847   :  { %v988_v5 = vmul.f32 %v986_v58, %v986_v58 }
 0x848   :  { %v987_v8 = vmul.f32 %v985_v62, %v985_v62 }
 0x849   :  { %v992_v18 = vsel %vm37_vm0, %v988_v5, 0.0  ;;  %v1152_v5 = vld [vmem:[%s2530_s8 + $0x50] sm:$0xff] }
 0x84a   :  { %993 = vadd.xlane.f32.xlu1 %v992_v18  ;;  %v989_v9 = vsel %vm37_vm0, %v987_v8, 0.0  ;;  %v1153_v8 = vld [vmem:[%s2530_s8 + $0x58] sm:$0xff] }
 0x84b   :  { %990 = vadd.xlane.f32.xlu0 %v989_v9  ;;  %v1681_v18 = vpack.c.bf16 %v1153_v8, %v1152_v5  ;;  %v1170_v9 = vld [vmem:[%s2530_s8 + $0xe0] sm:$0xff] }
 0x84c   :  { %v1683_v13 = vpack.c.bf16 %v1171_v52, %v1170_v9  ;;  %v1303_v8 = vld [vmem:[%s2532_s9] ss:$0 sm:$0xff] }
 0x8d7   :  { %v994_v36 = vpop.xlane.xlu1 %993 }
 0x8d8   :  { %v996_v45 = vmul.f32 0.03125, %v994_v36  ;;  %v991_v47 = vpop.xlane.xlu0 %990 }
 0x8d9   :  { %v995_v50 = vmul.f32 0.03125, %v991_v47 }
 0x8da   :  { %v998_v51 = vadd.f32 1e-05, %v996_v45 }
 0x8db   :  { %v997_v2 = vadd.f32 1e-05, %v995_v50 }
 0x8dd   :  { %1852 = vrsqrt.f32 %v997_v2 }
 0x8de   :  { %1854 = vrsqrt.f32 %v998_v51 }
 0x8e7   :  { %v1853_v44 = vpop.eup %1852 }
 0x8e8   :  { %v1001_v32 = vmul.f32 %v1853_v44, %v985_v62  ;;  %v1855_v56 = vpop.eup %1854 }
 0x8e9   :  { %v1002_v61 = vmul.f32 %v1855_v56, %v986_v58  ;;  %v1169_v58 = vld [vmem:[%s2530_s8 + $0xd8] sm:$0xff] }
 0x8ea   :  { %1301 = vmatmul.mubr.msk.f32.vlgmr.msra.gmra.mrb[22].mxu0 %vm37_vm0, %v1001_v32  ;;  %v1679_v62 = vpack.c.bf16 %v1169_v58, %v1168_v59 }
 0x8eb   :  { %1099 = vmatprep.mubr.f32.mxu0 %v1866_v25  ;;  %v1161_v25 = vld [vmem:[%s2530_s8 + $0x98] sm:$0xff] }
 0x8ec   :  { %v1663_v7 = vpack.c.bf16 %v1161_v25, %v1160_v42 }
 0x8ee   :  { %1302 = vmatmul.mubr.msk.f32.gmra.mrb[24].mxu0 %vm37_vm0, %v1002_v61  ;;  %1664 = vmatprep.subr.bf16.mxu1 %v1663_v7 }
 0x8ef   :  { %1666 = vmatpush3.bf16.msra.mxu1 %v1665_v60 }
 0x8f0   :  { %1668 = vmatprep.subr.bf16.mxu1 %v1667_v4 }
 0x8f3   :  { %1670 = vmatpush3.bf16.msra.mxu1 %v1669_v21 }
 0x8f4   :  { %1672 = vmatprep.subr.bf16.mxu1 %v1671_v23 }
 0x8f7   :  { %1674 = vmatpush3.bf16.msra.mxu1 %v1673_v26 }
 0x8f8   :  { %1676 = vmatprep.subr.bf16.mxu1 %v1675_v3 }
 0x8fb   :  { %1678 = vmatpush3.bf16.msra.mxu1 %v1677_v12 }
 0x8fc   :  { %1680 = vmatprep.subr.bf16.mxu1 %v1679_v62 }
 0x8ff   :  { %1682 = vmatpush3.bf16.msra.mxu1 %v1681_v18 }
 0x900   :  { %1684 = vmatprep.subr.bf16.mxu1 %v1683_v13 }
 0x903   :  { %1686 = vmatpush3.bf16.msra.mxu1 %v1685_v28 }
 0x904   :  { %1688 = vmatprep.subr.bf16.mxu1 %v1687_v31 }
 0x907   :  { %1690 = vmatpush3.bf16.msra.mxu1 %v1689_v34 }
 0x9bd   :  { %v1095_v43 = vpop.f32.mrb[22].mxu0 }
 0x9be   :  { %v1096_v36 = vadd.f32 %v1095_v43, %v1016_v37  ;;  %v1097_v45 = vpop.f32.mrb[23].mxu0 }
 0x9bf   :  { %v1098_v47 = vadd.f32 %v1097_v45, %v1020_v40 }
 0x9c0   :  { %v1106_v50 = vmul.f32 %v1096_v36, %v1096_v36 }
 0x9c1   :  { %v1107_v51 = vmul.f32 %v1098_v47, %v1098_v47  ;;  %v1101_v2 = vpop.f32.mrb[24].mxu0 }
 0x9c2   :  { %v1110_v44 = vmul.f32 %v1106_v50, %v1096_v36  ;;  %v1102_v32 = vadd.f32 %v1101_v2, %v1016_v37  ;;  %v1103_v56 = vpop.f32.mrb[25].mxu0 }
 0x9c3   :  { %v1111_v61 = vmul.f32 %v1107_v51, %v1098_v47  ;;  %v1104_v17 = vadd.f32 %v1103_v56, %v1020_v40 }
 0x9c4   :  { %v1114_v63 = vmul.f32 0.044715, %v1110_v44  ;;  %v1108_v0 = vmul.f32 %v1102_v32, %v1102_v32 }
 0x9c5   :  { %v1115_v42 = vmul.f32 0.044715, %v1111_v61  ;;  %v1109_v25 = vmul.f32 %v1104_v17, %v1104_v17 }
 0x9c6   :  { %v1118_v39 = vadd.f32 %v1114_v63, %v1096_v36  ;;  %v1112_v7 = vmul.f32 %v1108_v0, %v1102_v32 }
 0x9c7   :  { %v1119_v38 = vadd.f32 %v1115_v42, %v1098_v47  ;;  %v1113_v48 = vmul.f32 %v1109_v25, %v1104_v17 }
 0x9c8   :  { %v1122_v11 = vmul.f32 0.7978846, %v1118_v39  ;;  %v1116_v41 = vmul.f32 0.044715, %v1112_v7 }
 0x9c9   :  { %v1123_v60 = vmul.f32 0.7978846, %v1119_v38  ;;  %v1117_v14 = vmul.f32 0.044715, %v1113_v48 }
 0x9ca   :  { %1856 = vtanh.f32 %v1122_v11  ;;  %v1120_v49 = vadd.f32 %v1116_v41, %v1102_v32 }
 0x9cb   :  { %v1121_v4 = vadd.f32 %v1117_v14, %v1104_v17  ;;  %1858 = vtanh.f32 %v1123_v60 }
 0x9cc   :  { %v1124_v19 = vmul.f32 0.7978846, %v1120_v49 }
 0x9cd   :  { %v1125_v20 = vmul.f32 0.7978846, %v1121_v4 }
 0x9ce   :  { %1860 = vtanh.f32 %v1124_v19 }
 0x9cf   :  { %1862 = vtanh.f32 %v1125_v20 }
 0x9d4   :  { %v1857_v21 = vpop.eup %1856 }
 0x9d5   :  { %v1859_v6 = vpop.eup %1858  ;;  %v1130_v22 = vadd.f32 1.0, %v1857_v21 }
 0x9d6   :  { %v1131_v23 = vadd.f32 1.0, %v1859_v6 }
 0x9d7   :  { %v1134_v24 = vmul.f32 0.5, %v1130_v22 }
 0x9d8   :  { %v1861_v10 = vpop.eup %1860  ;;  %v1135_v26 = vmul.f32 0.5, %v1131_v23 }
 0x9d9   :  { %v1863_v46 = vpop.eup %1862  ;;  %v1132_v54 = vadd.f32 1.0, %v1861_v10  ;;  %v1138_v57 = vmul.f32 %v1134_v24, %v1096_v36 }
 0x9da   :  { %v1139_v3 = vmul.f32 %v1135_v26, %v1098_v47  ;;  %v1133_v55 = vadd.f32 1.0, %v1863_v46 }
 0x9db   :  { %v1136_v12 = vmul.f32 0.5, %v1132_v54 }
 0x9dc   :  { %1245 = vmatprep.mubr.f32.mxu1 %v1139_v3  ;;  %v1137_v59 = vmul.f32 0.5, %v1133_v55 }
 0x9dd   :  { %1246 = vmatmul.mubr.f32.vlgmr.msra.gmra.mrb[16].mxu1 %v1138_v57  ;;  %v1140_v62 = vmul.f32 %v1136_v12, %v1102_v32 }
 0x9de   :  { %v1141_v58 = vmul.f32 %v1137_v59, %v1104_v17 }
 0x9e0   :  { %1250 = vmatprep.mubr.f32.mxu1 %v1141_v58 }
 0x9e1   :  { %1251 = vmatmul.mubr.f32.gmra.mrb[18].mxu1 %v1140_v62 }
 0xab0   :  { %v1410_v5 = vpop.f32.mrb[16].mxu1 }
 0xab1   :  { %v1411_v18 = vpop.f32.mrb[17].mxu1 }
 0xab2   :  { %v1412_v9 = vadd.f32 %v1411_v18, %v1410_v5 }
 0xab4   :  { %v1248_v52 = vadd.f32 %v1412_v9, %v1303_v8  ;;  %v1413_v13 = vpop.f32.mrb[18].mxu1 }
 0xab5   :  { %v1414_v15 = vpop.f32.mrb[19].mxu1 }
 0xab6   :  { %v1256_v27 = vadd.f32 %v1248_v52, %v2370_v16  ;;  %v1415_v28 = vadd.f32 %v1414_v15, %v1413_v13 }
 0xab8   :  { %1258 = vst.msk [vmem:[%s2533_s10] sm:$0xff] %vm37_vm0, %v1256_v27  ;;  %v1253_v29 = vadd.f32 %v1415_v28, %v1303_v8 }
 0xaba   :  { %v1257_v30 = vadd.f32 %v1253_v29, %v2368_v53 }
 0xabc   :  { %1259 = vst.msk [vmem:[%s2533_s10 + $0x8] sm:$0xff] %vm37_vm0, %v1257_v30 }

</bundles_post_ra>
